<compile_context>
chip_gen: v5e
topology: v5e:2x2
jax: 0.10.0
libtpu: 0.0.40
codegen_flags: <defaults>
</compile_context>

<pallas_src>
import functools

import jax
import jax.numpy as jnp
from jax.experimental import pallas as pl
from jax.experimental.pallas import tpu as pltpu


def _act(v, sigma):
    if sigma == "tanh":
        return jnp.tanh(v)
    if sigma == "sigmoid":
        return jax.nn.sigmoid(v)
    if sigma == "relu":
        return jnp.maximum(v, 0.0)
    if sigma == "identity":
        return v
    # Mirror the PyTorch module: unknown sigma falls back to tanh.
    return jnp.tanh(v)


def _round_up(n, m):
    return ((n + m - 1) // m) * m


def _system_general_kernel(xu_ref, wv_ref, d11s_ref, wout_ref, b1_ref, out_ref,
                           *, nq, sigma):
    xu = xu_ref[...]        # (din_pad, Bt)  rows = [xi.T ; u.T ; ones ; 0-pad]
    Wv = wv_ref[...]        # (nq, din_pad)  [C1 | D12 | bv | 0]
    D11s = d11s_ref[...]    # (nq, nq)       strictly-lower D11
    Wout = wout_ref[...]    # (nx, din_pad)  [A  | B2  | bx | 0]
    B1 = b1_ref[...]        # (nx, nq)

    # w-independent part of v, batch lane-dense.
    v_acc = jnp.dot(Wv, xu, preferred_element_type=jnp.float32)       # (nq, Bt)
    # Issue the big xu-dependent output matmul now: its MXU drain overlaps the
    # serial activation (EUP) chain below, and xu's live range ends here.
    acc_out = jnp.dot(Wout, xu, preferred_element_type=jnp.float32)   # (nx, Bt)

    # Forward substitution over the strictly-lower D11 coupling.  Row i of
    # v_acc is final once channels j < i have contributed, so
    #   w_i = act(v_acc[i, :]);   v_acc += D11s[:, i] (outer) w_i
    # The row read is a static sublane slice (no cross-lane traffic); the
    # update is a (nq,1)x(1,Bt) broadcast FMA on the VPU.
    # Static Python loop is fine at nq=8; switch to lax.fori_loop(unroll=True)
    # if nq grows.
    for i in range(nq - 1):
        w_i = _act(v_acc[i:i + 1, :], sigma)              # (1, Bt)
        v_acc = v_acc + D11s[:, i:i + 1] * w_i            # (nq, Bt)
    w = _act(v_acc, sigma)                                # (nq, Bt), vectorized

    acc_out = acc_out + jnp.dot(B1, w, preferred_element_type=jnp.float32)
    out_ref[...] = acc_out.astype(out_ref.dtype)


def pack_system_general(params, *, has_bias=False):
    """One-time host-side packing of the NODE_REN weights (call once, reuse)."""
    A = jnp.asarray(params["A"], jnp.float32)
    B1 = jnp.asarray(params["B1"], jnp.float32)
    B2 = jnp.asarray(params["B2"], jnp.float32)
    C1 = jnp.asarray(params["C1"], jnp.float32)
    D11 = jnp.asarray(params["D11"], jnp.float32)
    D12 = jnp.asarray(params["D12"], jnp.float32)
    nx, nu, nq = A.shape[0], B2.shape[1], C1.shape[0]

    if has_bias:
        bv = jnp.asarray(params["bv"], jnp.float32).reshape(nq, 1)
        bx = jnp.asarray(params["bx"], jnp.float32).reshape(nx, 1)
    else:  # module default: null biases
        bv = jnp.zeros((nq, 1), jnp.float32)
        bx = jnp.zeros((nx, 1), jnp.float32)

    din = nx + nu + 1                       # +1 ones-row carrying the bias
    din_pad = _round_up(din, 8)             # sublane-aligned operand rows

    def pad_cols(m):
        return jnp.pad(m, ((0, 0), (0, din_pad - m.shape[1])))

    Wv = pad_cols(jnp.concatenate([C1, D12, bv], axis=1))     # (nq, din_pad)
    Wout = pad_cols(jnp.concatenate([A, B2, bx], axis=1))     # (nx, din_pad)
    D11s = jnp.tril(D11, -1)                                  # (nq, nq)

    return {"Wv": Wv, "Wout": Wout, "D11s": D11s, "B1": B1,
            "nx": nx, "nu": nu, "nq": nq, "din_pad": din_pad}


def system_general_forward(xi, u, packed, *, sigma="tanh"):
    """Pallas implementation of _System_general.forward(t, xi, u)."""
    nx = packed["nx"]
    nu = packed["nu"]
    nq = packed["nq"]
    din_pad = packed["din_pad"]
    B = xi.shape[0]

    # Fixed lane-block over batch.  >=2 parallel blocks once B > 128 (feeds
    # both v7x TCs / pipelines DMA); bigger blocks for large B amortize the
    # ~0.35us per grid step.  Per-block VMEM is tiny (<1 MiB) on all gens.
    if B <= 128:
        block_b = 128
    elif B <= 4096:
        block_b = 256
    else:
        block_b = 512
    Bp = _round_up(B, block_b)

    # Batch-on-lanes input slab: rows = [xi.T ; u.T ; ones ; zero pad].
    # Padded batch columns are all-zero (no ones-row entry) -> act(0)=0, and
    # those output columns are sliced away below.
    xuT = jnp.zeros((din_pad, Bp), jnp.float32)
    xuT = xuT.at[:nx, :B].set(xi.T.astype(jnp.float32))
    xuT = xuT.at[nx:nx + nu, :B].set(u.T.astype(jnp.float32))
    xuT = xuT.at[nx + nu, :B].set(1.0)        # ones row -> bias columns in W*

    kernel = functools.partial(_system_general_kernel, nq=nq, sigma=sigma)
    outT = pl.pallas_call(
        kernel,
        out_shape=jax.ShapeDtypeStruct((nx, Bp), jnp.float32),
        grid=(Bp // block_b,),
        in_specs=[
            pl.BlockSpec((din_pad, block_b), lambda i: (0, i)),   # xu
            pl.BlockSpec((nq, din_pad), lambda i: (0, 0)),        # Wv
            pl.BlockSpec((nq, nq), lambda i: (0, 0)),             # D11s
            pl.BlockSpec((nx, din_pad), lambda i: (0, 0)),        # Wout
            pl.BlockSpec((nx, nq), lambda i: (0, 0)),             # B1
        ],
        out_specs=pl.BlockSpec((nx, block_b), lambda i: (0, i)),
        compiler_params=pltpu.CompilerParams(
            dimension_semantics=("parallel",)),
    )(xuT, packed["Wv"], packed["D11s"], packed["Wout"], packed["B1"])

    return outT[:, :B].T                      # back to (B, nx)


def _reference_forward(xi, u, params, *, sigma="tanh", has_bias=False):
    """Pure-JAX reference mirroring the PyTorch forward() (honors has_bias)."""
    A, B1, B2, C1, D11, D12 = (params[k] for k in
                               ("A", "B1", "B2", "C1", "D11", "D12"))
    nq = C1.shape[0]
    nx = A.shape[0]
    B = xi.shape[0]
    if has_bias:
        bv = params["bv"].reshape(nq)
        bx = params["bx"].reshape(nx)
    else:
        bv = jnp.zeros((nq,), jnp.float32)
        bx = jnp.zeros((nx,), jnp.float32)
    D11s = jnp.tril(D11, -1)
    w = jnp.zeros((B, nq), dtype=jnp.float32)
    for i in range(nq):
        v = (xi @ C1[i, :] + w @ D11s[i, :] + bv[i] + u @ D12[i, :])[:, None]
        w = w.at[:, i:i + 1].set(_act(v, sigma))
    return xi @ A.T + w @ B1.T + u @ B2.T + bx[None, :]


if __name__ == "__main__":
    # Module hyper-parameters (small, consistent with the constructor).
    nx, ny, nu, nq = 32, 4, 4, 8
    batch = 8
    sigma = "tanh"

    key = jax.random.PRNGKey(0)
    keys = jax.random.split(key, 14)
    std = 1.0
    params = {
        "A":   jax.random.normal(keys[0], (nx, nx), jnp.float32) * std,
        "B1":  jax.random.normal(keys[1], (nx, nq), jnp.float32) * std,
        "B2":  jax.random.normal(keys[2], (nx, nu), jnp.float32) * std,
        "C1":  jax.random.normal(keys[3], (nq, nx), jnp.float32) * std,
        "D11": jax.random.normal(keys[4], (nq, nq), jnp.float32) * std,
        "D12": jax.random.normal(keys[5], (nq, nu), jnp.float32) * std,
        # bias=False (module default) -> zero biases.
        "bx":  jnp.zeros((nx, 1), jnp.float32),
        "bv":  jnp.zeros((nq, 1), jnp.float32),
    }
    # (C2, D21, D22, by only enter output(), which is not part of forward().)

    xi = jax.random.normal(keys[10], (batch, nx), jnp.float32)
    u = jax.random.normal(keys[11], (batch, nu), jnp.float32)

    # --- primary path: bias=False (module default), small batch -------------
    packed = pack_system_general(params, has_bias=False)
    out = system_general_forward(xi, u, packed, sigma=sigma)
    out = jax.block_until_ready(out)
    ref = _reference_forward(xi, u, params, sigma=sigma, has_bias=False)
    assert out.shape == (batch, nx)
    assert jnp.allclose(out, ref, atol=1e-4, rtol=1e-4), "mismatch (bias=False)"

    # --- secondary: bias=True, non-multiple batch (padding + 2 grid blocks) -
    big_batch = 300
    params_b = dict(params)
    params_b["bx"] = jax.random.normal(keys[12], (nx, 1), jnp.float32) * std
    params_b["bv"] = jax.random.normal(keys[13], (nq, 1), jnp.float32) * std
    xi_b = jax.random.normal(keys[6], (big_batch, nx), jnp.float32)
    u_b = jax.random.normal(keys[7], (big_batch, nu), jnp.float32)
    packed_b = pack_system_general(params_b, has_bias=True)
    out_b = system_general_forward(xi_b, u_b, packed_b, sigma=sigma)
    out_b = jax.block_until_ready(out_b)
    ref_b = _reference_forward(xi_b, u_b, params_b, sigma=sigma, has_bias=True)
    assert out_b.shape == (big_batch, nx)
    assert jnp.allclose(out_b, ref_b, atol=1e-4, rtol=1e-4), "mismatch (bias=True)"

    print("KERNEL_OK")
</pallas_src>

<mosaic_0001>
module attributes {stable_mosaic.version = 11 : i64} {
  func.func @_system_general_kernel(%arg0: i32, %arg1: memref<40x128xf32, #tpu.memory_space<vmem>>, %arg2: memref<8x40xf32, #tpu.memory_space<vmem>>, %arg3: memref<8x8xf32, #tpu.memory_space<vmem>>, %arg4: memref<32x40xf32, #tpu.memory_space<vmem>>, %arg5: memref<32x8xf32, #tpu.memory_space<vmem>>, %arg6: memref<32x128xf32, #tpu.memory_space<vmem>>) attributes {dimension_semantics = [#tpu.dimension_semantics<parallel>], iteration_bounds = array<i64: 1>, scalar_prefetch = 0 : i64, scratch_operands = 0 : i64, tpu.core_type = #tpu.core_type<tc>, window_params = [{transform_indices = @transform_0, window_bounds = array<i64: 40, 128>}, {pipeline_mode = #tpu.pipeline_mode<synchronous>, transform_indices = @transform_1, window_bounds = array<i64: 8, 40>}, {pipeline_mode = #tpu.pipeline_mode<synchronous>, transform_indices = @transform_2, window_bounds = array<i64: 8, 8>}, {pipeline_mode = #tpu.pipeline_mode<synchronous>, transform_indices = @transform_3, window_bounds = array<i64: 32, 40>}, {pipeline_mode = #tpu.pipeline_mode<synchronous>, transform_indices = @transform_4, window_bounds = array<i64: 32, 8>}, {transform_indices = @transform_5, window_bounds = array<i64: 32, 128>}]} {
    %c0 = arith.constant 0 : index
    %c0_0 = arith.constant 0 : index
    %0 = vector.load %arg1[%c0, %c0_0] : memref<40x128xf32, #tpu.memory_space<vmem>>, vector<40x128xf32>
    %c0_1 = arith.constant 0 : index
    %c0_2 = arith.constant 0 : index
    %1 = vector.load %arg2[%c0_1, %c0_2] : memref<8x40xf32, #tpu.memory_space<vmem>>, vector<8x40xf32>
    %c0_3 = arith.constant 0 : index
    %c0_4 = arith.constant 0 : index
    %2 = vector.load %arg3[%c0_3, %c0_4] : memref<8x8xf32, #tpu.memory_space<vmem>>, vector<8x8xf32>
    %c0_5 = arith.constant 0 : index
    %c0_6 = arith.constant 0 : index
    %3 = vector.load %arg4[%c0_5, %c0_6] : memref<32x40xf32, #tpu.memory_space<vmem>>, vector<32x40xf32>
    %c0_7 = arith.constant 0 : index
    %c0_8 = arith.constant 0 : index
    %4 = vector.load %arg5[%c0_7, %c0_8] : memref<32x8xf32, #tpu.memory_space<vmem>>, vector<32x8xf32>
    %cst = arith.constant dense<0.000000e+00> : vector<8x128xf32>
    %5 = tpu.matmul %1, %0, %cst {dimension_numbers = #tpu.dot_dimension_numbers<[1], [0], [0], [1], [0, 0, 1, 1], [], []>} : vector<8x40xf32>, vector<40x128xf32>, vector<8x128xf32> -> vector<8x128xf32>
    %cst_9 = arith.constant dense<0.000000e+00> : vector<32x128xf32>
    %6 = tpu.matmul %3, %0, %cst_9 {dimension_numbers = #tpu.dot_dimension_numbers<[1], [0], [0], [1], [0, 0, 1, 1], [], []>} : vector<32x40xf32>, vector<40x128xf32>, vector<32x128xf32> -> vector<32x128xf32>
    %7 = vector.extract_strided_slice %5 {offsets = [0, 0], sizes = [1, 128], strides = [1, 1]} : vector<8x128xf32> to vector<1x128xf32>
    %8 = math.tanh %7 : vector<1x128xf32>
    %9 = vector.extract_strided_slice %2 {offsets = [0, 0], sizes = [8, 1], strides = [1, 1]} : vector<8x8xf32> to vector<8x1xf32>
    %10 = vector.broadcast %9 : vector<8x1xf32> to vector<8x128xf32>
    %11 = vector.broadcast %8 : vector<1x128xf32> to vector<8x128xf32>
    %12 = arith.mulf %10, %11 : vector<8x128xf32>
    %13 = arith.addf %5, %12 : vector<8x128xf32>
    %14 = vector.extract_strided_slice %13 {offsets = [1, 0], sizes = [1, 128], strides = [1, 1]} : vector<8x128xf32> to vector<1x128xf32>
    %15 = math.tanh %14 : vector<1x128xf32>
    %16 = vector.extract_strided_slice %2 {offsets = [0, 1], sizes = [8, 1], strides = [1, 1]} : vector<8x8xf32> to vector<8x1xf32>
    %17 = vector.broadcast %16 : vector<8x1xf32> to vector<8x128xf32>
    %18 = vector.broadcast %15 : vector<1x128xf32> to vector<8x128xf32>
    %19 = arith.mulf %17, %18 : vector<8x128xf32>
    %20 = arith.addf %13, %19 : vector<8x128xf32>
    %21 = vector.extract_strided_slice %20 {offsets = [2, 0], sizes = [1, 128], strides = [1, 1]} : vector<8x128xf32> to vector<1x128xf32>
    %22 = math.tanh %21 : vector<1x128xf32>
    %23 = vector.extract_strided_slice %2 {offsets = [0, 2], sizes = [8, 1], strides = [1, 1]} : vector<8x8xf32> to vector<8x1xf32>
    %24 = vector.broadcast %23 : vector<8x1xf32> to vector<8x128xf32>
    %25 = vector.broadcast %22 : vector<1x128xf32> to vector<8x128xf32>
    %26 = arith.mulf %24, %25 : vector<8x128xf32>
    %27 = arith.addf %20, %26 : vector<8x128xf32>
    %28 = vector.extract_strided_slice %27 {offsets = [3, 0], sizes = [1, 128], strides = [1, 1]} : vector<8x128xf32> to vector<1x128xf32>
    %29 = math.tanh %28 : vector<1x128xf32>
    %30 = vector.extract_strided_slice %2 {offsets = [0, 3], sizes = [8, 1], strides = [1, 1]} : vector<8x8xf32> to vector<8x1xf32>
    %31 = vector.broadcast %30 : vector<8x1xf32> to vector<8x128xf32>
    %32 = vector.broadcast %29 : vector<1x128xf32> to vector<8x128xf32>
    %33 = arith.mulf %31, %32 : vector<8x128xf32>
    %34 = arith.addf %27, %33 : vector<8x128xf32>
    %35 = vector.extract_strided_slice %34 {offsets = [4, 0], sizes = [1, 128], strides = [1, 1]} : vector<8x128xf32> to vector<1x128xf32>
    %36 = math.tanh %35 : vector<1x128xf32>
    %37 = vector.extract_strided_slice %2 {offsets = [0, 4], sizes = [8, 1], strides = [1, 1]} : vector<8x8xf32> to vector<8x1xf32>
    %38 = vector.broadcast %37 : vector<8x1xf32> to vector<8x128xf32>
    %39 = vector.broadcast %36 : vector<1x128xf32> to vector<8x128xf32>
    %40 = arith.mulf %38, %39 : vector<8x128xf32>
    %41 = arith.addf %34, %40 : vector<8x128xf32>
    %42 = vector.extract_strided_slice %41 {offsets = [5, 0], sizes = [1, 128], strides = [1, 1]} : vector<8x128xf32> to vector<1x128xf32>
    %43 = math.tanh %42 : vector<1x128xf32>
    %44 = vector.extract_strided_slice %2 {offsets = [0, 5], sizes = [8, 1], strides = [1, 1]} : vector<8x8xf32> to vector<8x1xf32>
    %45 = vector.broadcast %44 : vector<8x1xf32> to vector<8x128xf32>
    %46 = vector.broadcast %43 : vector<1x128xf32> to vector<8x128xf32>
    %47 = arith.mulf %45, %46 : vector<8x128xf32>
    %48 = arith.addf %41, %47 : vector<8x128xf32>
    %49 = vector.extract_strided_slice %48 {offsets = [6, 0], sizes = [1, 128], strides = [1, 1]} : vector<8x128xf32> to vector<1x128xf32>
    %50 = math.tanh %49 : vector<1x128xf32>
    %51 = vector.extract_strided_slice %2 {offsets = [0, 6], sizes = [8, 1], strides = [1, 1]} : vector<8x8xf32> to vector<8x1xf32>
    %52 = vector.broadcast %51 : vector<8x1xf32> to vector<8x128xf32>
    %53 = vector.broadcast %50 : vector<1x128xf32> to vector<8x128xf32>
    %54 = arith.mulf %52, %53 : vector<8x128xf32>
    %55 = arith.addf %48, %54 : vector<8x128xf32>
    %56 = math.tanh %55 : vector<8x128xf32>
    %cst_10 = arith.constant dense<0.000000e+00> : vector<32x128xf32>
    %57 = tpu.matmul %4, %56, %cst_10 {dimension_numbers = #tpu.dot_dimension_numbers<[1], [0], [0], [1], [0, 0, 1, 1], [], []>} : vector<32x8xf32>, vector<8x128xf32>, vector<32x128xf32> -> vector<32x128xf32>
    %58 = arith.addf %6, %57 : vector<32x128xf32>
    %c0_11 = arith.constant 0 : index
    %c0_12 = arith.constant 0 : index
    %59 = vector.load %arg6[%c0_11, %c0_12] : memref<32x128xf32, #tpu.memory_space<vmem>>, vector<32x128xf32>
    tpu.vector_store %arg6[%c0_11, %c0_12], %58 {strides = array<i32>} : memref<32x128xf32, #tpu.memory_space<vmem>>, vector<32x128xf32>,
    return
  }
  func.func @transform_0(%arg0: i32) -> (i32, i32) {
    %c0_i32 = arith.constant 0 : i32
    %c0_i32_0 = arith.constant 0 : i32
    return %c0_i32, %arg0 : i32, i32
  }
  func.func @transform_1(%arg0: i32) -> (i32, i32) {
    %c0_i32 = arith.constant 0 : i32
    %c0_i32_0 = arith.constant 0 : i32
    %c0_i32_1 = arith.constant 0 : i32
    return %c0_i32, %c0_i32_0 : i32, i32
  }
  func.func @transform_2(%arg0: i32) -> (i32, i32) {
    %c0_i32 = arith.constant 0 : i32
    %c0_i32_0 = arith.constant 0 : i32
    %c0_i32_1 = arith.constant 0 : i32
    return %c0_i32, %c0_i32_0 : i32, i32
  }
  func.func @transform_3(%arg0: i32) -> (i32, i32) {
    %c0_i32 = arith.constant 0 : i32
    %c0_i32_0 = arith.constant 0 : i32
    %c0_i32_1 = arith.constant 0 : i32
    return %c0_i32, %c0_i32_0 : i32, i32
  }
  func.func @transform_4(%arg0: i32) -> (i32, i32) {
    %c0_i32 = arith.constant 0 : i32
    %c0_i32_0 = arith.constant 0 : i32
    %c0_i32_1 = arith.constant 0 : i32
    return %c0_i32, %c0_i32_0 : i32, i32
  }
  func.func @transform_5(%arg0: i32) -> (i32, i32) {
    %c0_i32 = arith.constant 0 : i32
    %c0_i32_0 = arith.constant 0 : i32
    return %c0_i32, %arg0 : i32, i32
  }
}

</mosaic_0001>

<bundles_post_ra>
// kernel: tpu_custom_call.1
= control target key start
LH: loop header
LB: loop body
LE: loop exit
PB: predicated region body
PF: predicated region fallthrough
CT: control target
= control target key end

     0   :  { %10 = vsyncpa [#allocation3], 0  ;;  %s515_s0 = inlined_call_operand.vmem [shape: f32[40,128], index: 0, kind: input, shape index: {}]   ;;  %s516_s1 = inlined_call_operand.hbm [shape: f32[8,40], index: 1, kind: input, shape index: {}]   ;;  %s517_s2 = inlined_call_operand.hbm [shape: f32[8,8], index: 2, kind: input, shape index: {}]   ;;  %s518_s3 = inlined_call_operand.hbm [shape: f32[32,40], index: 3, kind: input, shape index: {}]   ;;  %s519_s4 = inlined_call_operand.vmem [shape: f32[32,8], index: 4, kind: input, shape index: {}]   ;;  %s520_s5 = inlined_call_operand.hbm [shape: f32[32,128], index: 5, kind: output, shape index: {}]  }
   0x1   :  { %11 = vsyncpa [#allocation6], 0  ;;  %s31_s20 = sshll.u32 %s517_s2, 4  ;;  %s32_s20 = int_to_ptr.hbm [resolvable:$true] %s31_s20 }
   0x2   :  { %12 = vsyncpa [#allocation4], 0  ;;  %s422_s21 = smov [#allocation5]   ;;  %s20_s25 = sshll.u32 %s516_s1, 4  ;;  %s21_s25 = int_to_ptr.hbm [resolvable:$true] %s20_s25 }
   0x3   :  { %s33_s22 = sshll.u32 %s422_s21, 4  ;;  %s423_s26 = smov [#allocation2]   ;;  %s34_s22 = int_to_ptr.vmem [resolvable:$true] %s33_s22 }
   0x4   :  { %36 = dma.hbm_to_vmem [thread:$0]  %s32_s20, 128, %s34_s22, [#allocation6]  }
   0x5   :  { %s22_s27 = sshll.u32 %s423_s26, 4  ;;  %s41_s30 = sshll.u32 %s518_s3, 4  ;;  %s23_s27 = int_to_ptr.vmem [resolvable:$true] %s22_s27  ;;  %s42_s30 = int_to_ptr.hbm [resolvable:$true] %s41_s30 }
   0x6   :  { %25 = dma.hbm_to_vmem [thread:$0]  %s21_s25, 128, %s23_s27, [#allocation3]  }
   0x7   :  { %s424_s2 = smov [#allocation7]   ;;  %s425_s7 = smov 128  }
   0x8   :  { %s43_s6 = sshll.u32 %s424_s2, 4  ;;  %s426_s8 = smov 8   ;;  %s44_s6 = int_to_ptr.vmem [resolvable:$true] %s43_s6 }
   0x9   :  { %49 = dma.hbm_to_vmem [thread:$0]  %s42_s30, 512, %s44_s6, [#allocation6], %s425_s7, %s425_s7, %s426_s8  }
   0xa   :  { %416 = dma.done.wait [#allocation3], 128  }
   0xb   :  { %417 = vsyncadd [#allocation3], 4294967168 }
   0xc   :  { %418 = dma.done.wait [#allocation6], 640  }
   0xd   :  { %419 = vsyncadd [#allocation6], 4294966656  ;;  %v427_v0 = vmov 0   ;;  %v428_v1 = vmov 2   ;;  %v429_v2 = vmov 4   ;;  %v68_v3 = vld [vmem:[%s515_s0 + $0x20] sm:$0xff] }
   0xe   :  { %296 = vset.pattern.permute.xlu0 %v427_v0  ;;  %298 = vset.pattern.permute.xlu1 %v428_v1  ;;  %v67_v4 = vld [vmem:[%s515_s0 + $0x18] sm:$0xff]  ;;  %v66_v5 = vld [vmem:[%s515_s0 + $0x10] sm:$0xff]  ;;  %v70_v6 = vld [vmem:[#allocation5] sm:$0xff]  ;;  %vm79_vm0 = vcmask 326656   ;;  %v430_v10 = vmov 1   ;;  %v431_v11 = vmov 3  }
   0xf   :  { %300 = vset.pattern.permute.xlu2 %v429_v2  ;;  %94 = vmatpush.msra.mxu0 %v68_v3  ;;  %v65_v7 = vld [vmem:[%s515_s0 + $0x8] sm:$0xff]  ;;  %v64_v8 = vld [vmem:[%s515_s0] sm:$0xff]  ;;  %v432_v12 = vmov 5   ;;  %v433_v13 = vmov 6   ;;  %v71_v30 = vld [vmem:[#allocation7] sm:$0xff]  ;;  %vm161_vm1 = vcmask 64512  }
  0x10   :  { %226 = vmatpush.msra.mxu2 %v68_v3  ;;  %278 = vmatpush.msra.mxu3 %v68_v3  ;;  %v69_v9 = vld [vmem:[#allocation2] sm:$0xff]  ;;  %v72_v39 = vld [vmem:[#allocation7 + $0x8] sm:$0xff]  ;;  %v74_v47 = vld [vmem:[#allocation7 + $0x18] sm:$0xff]  ;;  %s434_s24 = smov [#allocation8]  }
  0x11   :  { %95 = vmatpush.msra.mxu0 %v67_v4  ;;  %106 = vperm.xlu0 %296, %v70_v6   ;;  %v73_v42 = vld [vmem:[#allocation7 + $0x10] sm:$0xff]  ;;  %v76_v54 = vld [vmem:[%s519_s4 + $0x8] sm:$0xff]  ;;  %v77_v57 = vld [vmem:[%s519_s4 + $0x10] sm:$0xff]  ;;  %s252_s25 = sshll.u32 %s434_s24, 4  ;;  %s253_s25 = int_to_ptr.vmem [resolvable:$true] %s252_s25 }
  0x12   :  { %122 = vperm.xlu1 %298, %v70_v6   ;;  %138 = vperm.xlu2 %300, %v70_v6   ;;  %v75_v55 = vld [vmem:[%s519_s4] sm:$0xff]  ;;  %v78_v58 = vld [vmem:[%s519_s4 + $0x18] sm:$0xff]  ;;  %s254_s4 = sshll.u32 %s520_s5, 4  ;;  %s255_s4 = int_to_ptr.hbm [resolvable:$true] %s254_s4 }
  0x13   :  { %96 = vmatpush.msra.mxu0 %v66_v5  ;;  %227 = vmatpush.msra.mxu2 %v67_v4 }
  0x14   :  { %279 = vmatpush.msra.mxu3 %v67_v4 }
  0x15   :  { %97 = vmatpush.msra.mxu0 %v65_v7  ;;  %228 = vmatpush.msra.mxu2 %v66_v5 }
  0x16   :  { %280 = vmatpush.msra.mxu3 %v66_v5 }
  0x17   :  { %98 = vmatpush.msra.mxu0 %v64_v8  ;;  %229 = vmatpush.msra.mxu2 %v65_v7 }
  0x18   :  { %268 = vmatmul.msk.f32.vlgmr.msra.gmra.mxu0 %vm79_vm0, %v69_v9  ;;  %281 = vmatpush.msra.mxu3 %v65_v7 }
  0x19   :  { %297 = vset.pattern.permute.xlu0 %v430_v10  ;;  %230 = vmatpush.msra.mxu2 %v64_v8 }
  0x1a   :  { %114 = vperm.xlu0 %297, %v70_v6   ;;  %299 = vset.pattern.permute.xlu1 %v431_v11 }
  0x1b   :  { %130 = vperm.xlu1 %299, %v70_v6   ;;  %301 = vset.pattern.permute.xlu2 %v432_v12 }
  0x1c   :  { %146 = vperm.xlu2 %301, %v70_v6   ;;  %282 = vmatpush.msra.mxu3 %v64_v8 }
  0x1d   :  { %273 = vmatmul.msk.f32.vlgmr.msra.gmra.mxu2 %vm79_vm0, %v71_v30  ;;  %275 = vmatmul.msk.f32.vlgmr.msra.gmra.mxu3 %vm79_vm0, %v73_v42 }
  0x22   :  { %303 = vset.pattern.permute.xlu0 %v433_v13 }
  0x23   :  { %302 = vset.pattern.permute.xlu1 %v433_v13 }
  0x24   :  { %154 = vperm.xlu1 %302, %v70_v6  }
  0x25   :  { %274 = vmatmul.msk.f32.gmra.mxu2 %vm79_vm0, %v72_v39  ;;  %276 = vmatmul.msk.f32.gmra.mxu3 %vm79_vm0, %v74_v47 }
  0x6c   :  { %v139_v37 = vpop.permute.xlu2 %138 }
  0x76   :  { %v147_v44 = vpop.permute.xlu2 %146 }
  0x83   :  { %v107_v16 = vpop.permute.xlu0 %106 }
  0x84   :  { %v123_v26 = vpop.permute.xlu1 %122 }
  0x8c   :  { %v115_v21 = vpop.permute.xlu0 %114 }
  0x8d   :  { %v131_v32 = vpop.permute.xlu1 %130 }
  0x95   :  { %v100_v14 = vpop.f32.mrf.mxu0 }
  0x96   :  { %304 = vtanh.f32 %v100_v14  ;;  %v155_v50 = vpop.permute.xlu1 %154 }
  0x9c   :  { %v305_v15 = vpop.eup %304 }
  0x9d   :  { %v109_v17 = vperm.slane %v305_v15, 0 }
  0x9f   :  { %v110_v18 = vmul.f32 %v109_v17, %v107_v16 }
  0xa0   :  { %v232_v59 = vpop.f32.mrf.mxu2  ;;  %v238_v1 = vpop.f32.mrf.mxu3 }
  0xa1   :  { %v111_v19 = vadd.f32 %v110_v18, %v100_v14 }
  0xa3   :  { %306 = vtanh.f32 %v111_v19 }
  0xa8   :  { %v235_v60 = vpop.f32.mrf.mxu2  ;;  %v241_v4 = vpop.f32.mrf.mxu3 }
  0xa9   :  { %v307_v20 = vpop.eup %306 }
  0xaa   :  { %v117_v22 = vperm.slane %v307_v20, 1 }
  0xac   :  { %v118_v23 = vmul.f32 %v117_v22, %v115_v21 }
  0xae   :  { %v119_v24 = vadd.f32 %v118_v23, %v111_v19 }
  0xb0   :  { %308 = vtanh.f32 %v119_v24 }
  0xb6   :  { %v309_v25 = vpop.eup %308 }
  0xb7   :  { %v125_v27 = vperm.slane %v309_v25, 2 }
  0xb9   :  { %v126_v28 = vmul.f32 %v125_v27, %v123_v26 }
  0xbb   :  { %v127_v29 = vadd.f32 %v126_v28, %v119_v24 }
  0xbd   :  { %310 = vtanh.f32 %v127_v29 }
  0xc3   :  { %v311_v31 = vpop.eup %310 }
  0xc4   :  { %v133_v33 = vperm.slane %v311_v31, 3 }
  0xc6   :  { %v134_v34 = vmul.f32 %v133_v33, %v131_v32 }
  0xc8   :  { %v135_v35 = vadd.f32 %v134_v34, %v127_v29 }
  0xca   :  { %312 = vtanh.f32 %v135_v35 }
  0xd0   :  { %v313_v36 = vpop.eup %312 }
  0xd1   :  { %v141_v38 = vperm.slane %v313_v36, 4 }
  0xd3   :  { %v142_v40 = vmul.f32 %v141_v38, %v139_v37 }
  0xd5   :  { %v143_v41 = vadd.f32 %v142_v40, %v135_v35 }
  0xd7   :  { %314 = vtanh.f32 %v143_v41 }
  0xdd   :  { %v315_v43 = vpop.eup %314 }
  0xde   :  { %v149_v45 = vperm.slane %v315_v43, 5 }
  0xe0   :  { %v150_v46 = vmul.f32 %v149_v45, %v147_v44 }
  0xe2   :  { %v151_v48 = vadd.f32 %v150_v46, %v143_v41 }
  0xe4   :  { %316 = vtanh.f32 %v151_v48 }
  0xea   :  { %v317_v49 = vpop.eup %316 }
  0xeb   :  { %v157_v51 = vperm.slane %v317_v49, 6 }
  0xed   :  { %v158_v52 = vmul.f32 %v157_v51, %v155_v50 }
  0xef   :  { %v159_v53 = vadd.f32 %v158_v52, %v151_v48 }
  0xf1   :  { %318 = vtanh.f32 %v159_v53 }
  0xf7   :  { %v319_v56 = vpop.eup %318 }
  0xf8   :  { %189 = vmatpush.msrb.mxu0 %v319_v56  ;;  %277 = vmatpush.msra.mxu1 %v319_v56 }
  0xf9   :  { %270 = vmatmul.msk.f32.vlgmr.msra.gmra.mxu1 %vm161_vm1, %v76_v54  ;;  %269 = vmatmul.msk.f32.vlgmr.msrb.gmra.mxu0 %vm161_vm1, %v75_v55 }
 0x101   :  { %271 = vmatmul.msk.f32.gmra.mxu1 %vm161_vm1, %v77_v57 }
 0x109   :  { %272 = vmatmul.msk.f32.gmra.mxu1 %vm161_vm1, %v78_v58 }
 0x176   :  { %v194_v61 = vpop.f32.mrf.mxu1  ;;  %v191_v62 = vpop.f32.mrf.mxu0 }
 0x177   :  { %v236_v63 = vadd.f32 %v235_v60, %v194_v61  ;;  %v233_v0 = vadd.f32 %v232_v59, %v191_v62 }
 0x179   :  { %245 = vst [vmem:[#allocation8 + $0x8] sm:$0xff] %v236_v63 }
 0x17a   :  { %244 = vst [vmem:[#allocation8] sm:$0xff] %v233_v0 }
 0x17e   :  { %v197_v2 = vpop.f32.mrf.mxu1 }
 0x17f   :  { %v239_v3 = vadd.f32 %v238_v1, %v197_v2 }
 0x181   :  { %246 = vst [vmem:[#allocation8 + $0x10] sm:$0xff] %v239_v3 }
 0x186   :  { %v200_v5 = vpop.f32.mrf.mxu1 }
 0x187   :  { %v242_v6 = vadd.f32 %v241_v4, %v200_v5 }
 0x189   :  { %247 = vst [vmem:[#allocation8 + $0x18] sm:$0xff] %v242_v6 }
 0x18a   :  { %260 = dma.vmem_to_hbm [thread:$0]  %s253_s25, 512, %s255_s4, [#allocation4], %s425_s7, %s425_s7, %s426_s8  }
 0x18b   :  { %420 = dma.done.wait [#allocation4], 512  }
 0x18c   :  { %421 = vsyncadd [#allocation4], 4294966784 }
 0x18d   :  { %265 = vsyncpa [#allocation3], 1 }
 0x18e   :  { %266 = vsyncpa [#allocation6], 1 }
 0x18f   :  { %267 = vsyncpa [#allocation4], 1 }

</bundles_post_ra>
